<compile_context>
chip_gen: v7x
topology: tpu7x:2x2x1
jax: 0.10.0
libtpu: 0.0.40
codegen_flags: <defaults>
</compile_context>

<pallas_src>
import functools

import jax
import jax.numpy as jnp
from jax.experimental import pallas as pl
from jax.experimental.pallas import tpu as pltpu

EPS = 1e-5


def conv_block_kernel(x_ref, masks_ref, w1_ref, b1_ref, g1_ref, bt1_ref,
                      w2_ref, b2_ref, g2_ref, bt2_ref,
                      o_ref, mid_ref, sum_ref, ssq_ref, scale_ref, shift_ref,
                      *, width, inv_count):
    phase = pl.program_id(0)
    n = pl.program_id(1)
    hw = o_ref.shape[-1]

    def conv3x3(x, w_ref, b_ref):
        # x: (C, HW) f32, lane-dense. im2col via lane rolls + SAME-padding masks,
        # then ONE matmul with K = 9*C (instead of 9 small dots + 8 VPU adds).
        taps = []
        for dy in range(3):
            for dx in range(3):
                off = (dy - 1) * width + (dx - 1)
                if off == 0:
                    taps.append(x)                           # centre tap: no shift, mask == 1
                else:
                    t = dy * 3 + dx
                    shifted = pltpu.roll(x, shift=(-off) % hw, axis=1)
                    taps.append(shifted * masks_ref[t:t + 1, :])
        patches = jnp.concatenate(taps, axis=0)              # (9*C, HW)
        y = jnp.dot(w_ref[...], patches, preferred_element_type=jnp.float32)
        return y + b_ref[...]                                # bias (Cout, 1) broadcast over lanes

    def accum_stats(y):
        sum_ref[...] = sum_ref[...] + jnp.sum(y, axis=1, keepdims=True)
        ssq_ref[...] = ssq_ref[...] + jnp.sum(y * y, axis=1, keepdims=True)

    def finalize_bn(g_ref, bt_ref):
        mu = sum_ref[...] * inv_count
        var = ssq_ref[...] * inv_count - mu * mu             # biased variance, f32 accumulation
        scale = g_ref[...] * jax.lax.rsqrt(var + EPS)        # fold BN affine into one FMA
        scale_ref[...] = scale
        shift_ref[...] = bt_ref[...] - mu * scale
        sum_ref[...] = jnp.zeros_like(sum_ref)               # reset for the next BN layer
        ssq_ref[...] = jnp.zeros_like(ssq_ref)

    # -------- phase 0: conv1 per image, accumulate BN1 statistics --------
    @pl.when(phase == 0)
    def _():
        @pl.when(n == 0)
        def _():
            sum_ref[...] = jnp.zeros_like(sum_ref)
            ssq_ref[...] = jnp.zeros_like(ssq_ref)

        y = conv3x3(x_ref[0].astype(jnp.float32), w1_ref, b1_ref)
        mid_ref[n] = y
        accum_stats(y)

    # -------- phase 1: BN1 + ReLU, conv2 per image, accumulate BN2 statistics --------
    @pl.when(phase == 1)
    def _():
        @pl.when(n == 0)
        def _():
            finalize_bn(g1_ref, bt1_ref)

        a = jnp.maximum(mid_ref[n] * scale_ref[...] + shift_ref[...], 0.0)
        z = conv3x3(a, w2_ref, b2_ref)
        mid_ref[n] = z                                       # reuse the same scratch slot
        accum_stats(z)

    # -------- phase 2: BN2 + ReLU, write lane-dense output --------
    @pl.when(phase == 2)
    def _():
        @pl.when(n == 0)
        def _():
            finalize_bn(g2_ref, bt2_ref)

        out = jnp.maximum(mid_ref[n] * scale_ref[...] + shift_ref[...], 0.0)
        o_ref[0] = out.astype(o_ref.dtype)


def _tap_masks(h, w):
    """(9, H*W) f32 validity masks for the 3x3 SAME-padding taps, tap index t = dy*3 + dx."""
    i = jnp.arange(h * w, dtype=jnp.int32) // w
    j = jnp.arange(h * w, dtype=jnp.int32) % w
    masks = []
    for dy in range(3):
        for dx in range(3):
            oy, ox = dy - 1, dx - 1
            valid = (i + oy >= 0) & (i + oy < h) & (j + ox >= 0) & (j + ox < w)
            masks.append(valid.astype(jnp.float32))
    return jnp.stack(masks, axis=0)


@jax.jit
def conv_block_forward(x_nchw, params):
    """PyTorch-facing wrapper: x is NCHW, returns NCHW."""
    n, cin, h, w = x_nchw.shape
    cout = params["w1"].shape[0]
    hw = h * w

    x = x_nchw.reshape(n, cin, hw).astype(jnp.float32)       # channels-major, HW on lanes
    masks = _tap_masks(h, w)
    # OIHW -> (Cout, dy, dx, Cin) -> (Cout, 9*Cin): rows match im2col tap-major/channel-minor order.
    w1f = jnp.transpose(params["w1"], (0, 2, 3, 1)).reshape(cout, 9 * cin)
    w2f = jnp.transpose(params["w2"], (0, 2, 3, 1)).reshape(cout, 9 * cout)
    b1 = params["b1"].reshape(cout, 1)
    b2 = params["b2"].reshape(cout, 1)
    g1 = params["g1"].reshape(cout, 1)
    g2 = params["g2"].reshape(cout, 1)
    bt1 = params["bt1"].reshape(cout, 1)
    bt2 = params["bt2"].reshape(cout, 1)

    kernel = functools.partial(conv_block_kernel, width=w, inv_count=1.0 / (n * hw))
    const = lambda p, i: (0, 0)                              # params / masks: fetched once

    out = pl.pallas_call(
        kernel,
        out_shape=jax.ShapeDtypeStruct((n, cout, hw), x_nchw.dtype),
        grid_spec=pltpu.PrefetchScalarGridSpec(
            num_scalar_prefetch=0,
            grid=(3, n),                                     # (phase, image)
            in_specs=[
                # input image n is streamed (double-buffered) during phase 0 only
                pl.BlockSpec((1, cin, hw), lambda p, i: (jnp.where(p == 0, i, 0), 0, 0)),
                pl.BlockSpec((9, hw), const),
                pl.BlockSpec((cout, 9 * cin), const),
                pl.BlockSpec((cout, 1), const),
                pl.BlockSpec((cout, 1), const),
                pl.BlockSpec((cout, 1), const),
                pl.BlockSpec((cout, 9 * cout), const),
                pl.BlockSpec((cout, 1), const),
                pl.BlockSpec((cout, 1), const),
                pl.BlockSpec((cout, 1), const),
            ],
            # output block index only advances during phase 2 -> no garbage writebacks earlier
            out_specs=pl.BlockSpec((1, cout, hw), lambda p, i: (jnp.where(p == 2, i, 0), 0, 0)),
            scratch_shapes=[
                pltpu.VMEM((n, cout, hw), jnp.float32),      # conv1/conv2 raw outputs (reused)
                pltpu.VMEM((cout, 1), jnp.float32),          # per-channel sum
                pltpu.VMEM((cout, 1), jnp.float32),          # per-channel sum of squares
                pltpu.VMEM((cout, 1), jnp.float32),          # folded BN scale
                pltpu.VMEM((cout, 1), jnp.float32),          # folded BN shift
            ],
        ),
        compiler_params=pltpu.CompilerParams(
            dimension_semantics=("arbitrary", "arbitrary"),
            vmem_limit_bytes=32 * 1024 * 1024,
        ),
    )(x, masks, w1f, b1, g1, bt1, w2f, b2, g2, bt2)

    return out.reshape(n, cout, h, w)


def conv_block_reference(x, params):
    """Pure-JAX reference of the PyTorch forward (training-mode BatchNorm), full precision."""
    def conv(x, w, b):
        y = jax.lax.conv_general_dilated(
            x, w, window_strides=(1, 1), padding=((1, 1), (1, 1)),
            dimension_numbers=("NCHW", "OIHW", "NCHW"),
            precision=jax.lax.Precision.HIGHEST)
        return y + b[None, :, None, None]

    def bn_relu(x, g, bt):
        mu = jnp.mean(x, axis=(0, 2, 3), keepdims=True)
        var = jnp.mean((x - mu) ** 2, axis=(0, 2, 3), keepdims=True)
        y = (x - mu) * jax.lax.rsqrt(var + EPS)
        y = y * g[None, :, None, None] + bt[None, :, None, None]
        return jnp.maximum(y, 0.0)

    y = bn_relu(conv(x, params["w1"], params["b1"]), params["g1"], params["bt1"])
    z = bn_relu(conv(y, params["w2"], params["b2"]), params["g2"], params["bt2"])
    return z


def init_params(key, in_ch, out_ch):
    ks = jax.random.split(key, 8)
    return {
        "w1": 0.3 * jax.random.normal(ks[0], (out_ch, in_ch, 3, 3), jnp.float32),
        "b1": 0.1 * jax.random.normal(ks[1], (out_ch,), jnp.float32),
        "g1": 1.0 + 0.1 * jax.random.normal(ks[2], (out_ch,), jnp.float32),
        "bt1": 0.1 * jax.random.normal(ks[3], (out_ch,), jnp.float32),
        "w2": 0.3 * jax.random.normal(ks[4], (out_ch, out_ch, 3, 3), jnp.float32),
        "b2": 0.1 * jax.random.normal(ks[5], (out_ch,), jnp.float32),
        "g2": 1.0 + 0.1 * jax.random.normal(ks[6], (out_ch,), jnp.float32),
        "bt2": 0.1 * jax.random.normal(ks[7], (out_ch,), jnp.float32),
    }


if __name__ == "__main__":
    key = jax.random.PRNGKey(0)
    k_x, k_p = jax.random.split(key)

    N, in_ch, out_ch, H, W = 2, 4, 8, 16, 16
    x = jax.random.normal(k_x, (N, in_ch, H, W), jnp.float32)
    params = init_params(k_p, in_ch, out_ch)

    out = conv_block_forward(x, params)
    out = jax.block_until_ready(out)

    ref = conv_block_reference(x, params)
    assert out.shape == (N, out_ch, H, W), out.shape
    # Kernel matmuls use default MXU precision (bf16 inputs, f32 accumulate) per the perf
    # guidance, so the tolerance against the HIGHEST-precision reference is relaxed.
    max_err = float(jnp.max(jnp.abs(out - ref)))
    assert max_err < 1e-1, max_err

    print("KERNEL_OK")
</pallas_src>

<mosaic_0001>
module attributes {stable_mosaic.version = 11 : i64} {
  func.func @conv_block_kernel(%arg0: i32, %arg1: i32, %arg2: memref<1x4x256xf32, #tpu.memory_space<vmem>>, %arg3: memref<9x256xf32, #tpu.memory_space<vmem>>, %arg4: memref<8x36xf32, #tpu.memory_space<vmem>>, %arg5: memref<8x1xf32, #tpu.memory_space<vmem>>, %arg6: memref<8x1xf32, #tpu.memory_space<vmem>>, %arg7: memref<8x1xf32, #tpu.memory_space<vmem>>, %arg8: memref<8x72xf32, #tpu.memory_space<vmem>>, %arg9: memref<8x1xf32, #tpu.memory_space<vmem>>, %arg10: memref<8x1xf32, #tpu.memory_space<vmem>>, %arg11: memref<8x1xf32, #tpu.memory_space<vmem>>, %arg12: memref<1x8x256xf32, #tpu.memory_space<vmem>>, %arg13: memref<2x8x256xf32, #tpu.memory_space<vmem>>, %arg14: memref<8x1xf32, #tpu.memory_space<vmem>>, %arg15: memref<8x1xf32, #tpu.memory_space<vmem>>, %arg16: memref<8x1xf32, #tpu.memory_space<vmem>>, %arg17: memref<8x1xf32, #tpu.memory_space<vmem>>) attributes {dimension_semantics = [#tpu.dimension_semantics<arbitrary>, #tpu.dimension_semantics<arbitrary>], iteration_bounds = array<i64: 3, 2>, scalar_prefetch = 0 : i64, scratch_operands = 5 : i64, tpu.core_type = #tpu.core_type<tc>, window_params = [{transform_indices = @transform_0, window_bounds = array<i64: 1, 4, 256>}, {pipeline_mode = #tpu.pipeline_mode<synchronous>, transform_indices = @transform_1, window_bounds = array<i64: 9, 256>}, {pipeline_mode = #tpu.pipeline_mode<synchronous>, transform_indices = @transform_2, window_bounds = array<i64: 8, 36>}, {pipeline_mode = #tpu.pipeline_mode<synchronous>, transform_indices = @transform_3, window_bounds = array<i64: 8, 1>}, {pipeline_mode = #tpu.pipeline_mode<synchronous>, transform_indices = @transform_4, window_bounds = array<i64: 8, 1>}, {pipeline_mode = #tpu.pipeline_mode<synchronous>, transform_indices = @transform_5, window_bounds = array<i64: 8, 1>}, {pipeline_mode = #tpu.pipeline_mode<synchronous>, transform_indices = @transform_6, window_bounds = array<i64: 8, 72>}, {pipeline_mode = #tpu.pipeline_mode<synchronous>, transform_indices = @transform_7, window_bounds = array<i64: 8, 1>}, {pipeline_mode = #tpu.pipeline_mode<synchronous>, transform_indices = @transform_8, window_bounds = array<i64: 8, 1>}, {pipeline_mode = #tpu.pipeline_mode<synchronous>, transform_indices = @transform_9, window_bounds = array<i64: 8, 1>}, {transform_indices = @transform_10, window_bounds = array<i64: 1, 8, 256>}]} {
    %c0_i32 = arith.constant 0 : i32
    %0 = arith.cmpi eq, %arg0, %c0_i32 : i32
    %1 = arith.extui %0 : i1 to i32
    %c0_i32_0 = arith.constant 0 : i32
    %2 = arith.cmpi ne, %1, %c0_i32_0 : i32
    scf.if %2 {
      %c0_i32_3 = arith.constant 0 : i32
      %9 = arith.cmpi eq, %arg1, %c0_i32_3 : i32
      %10 = arith.extui %9 : i1 to i32
      %c0_i32_4 = arith.constant 0 : i32
      %11 = arith.cmpi ne, %10, %c0_i32_4 : i32
      scf.if %11 {
        %cst_33 = arith.constant 0.000000e+00 : f32
        %67 = vector.broadcast %cst_33 : f32 to vector<8x1xf32>
        %c0_34 = arith.constant 0 : index
        %c0_35 = arith.constant 0 : index
        %68 = vector.load %arg14[%c0_34, %c0_35] : memref<8x1xf32, #tpu.memory_space<vmem>>, vector<8x1xf32>
        tpu.vector_store %arg14[%c0_34, %c0_35], %67 {strides = array<i32>} : memref<8x1xf32, #tpu.memory_space<vmem>>, vector<8x1xf32>,
        %cst_36 = arith.constant 0.000000e+00 : f32
        %69 = vector.broadcast %cst_36 : f32 to vector<8x1xf32>
        %c0_37 = arith.constant 0 : index
        %c0_38 = arith.constant 0 : index
        %70 = vector.load %arg15[%c0_37, %c0_38] : memref<8x1xf32, #tpu.memory_space<vmem>>, vector<8x1xf32>
        tpu.vector_store %arg15[%c0_37, %c0_38], %69 {strides = array<i32>} : memref<8x1xf32, #tpu.memory_space<vmem>>, vector<8x1xf32>,
      } else {
      }
      %c0 = arith.constant 0 : index
      %c0_5 = arith.constant 0 : index
      %c0_6 = arith.constant 0 : index
      %12 = vector.load %arg2[%c0, %c0_5, %c0_6] : memref<1x4x256xf32, #tpu.memory_space<vmem>>, vector<1x4x256xf32>
      %13 = vector.shape_cast %12 : vector<1x4x256xf32> to vector<4x256xf32>
      %c17_i32 = arith.constant 17 : i32
      %14 = tpu.dynamic_rotate %13 by %c17_i32 dim 1 : vector<4x256xf32>, i32 -> vector<4x256xf32>
      %c0_7 = arith.constant 0 : index
      %c0_8 = arith.constant 0 : index
      %15 = vector.load %arg3[%c0_7, %c0_8] : memref<9x256xf32, #tpu.memory_space<vmem>>, vector<1x256xf32>
      %16 = vector.broadcast %15 : vector<1x256xf32> to vector<4x256xf32>
      %17 = arith.mulf %14, %16 : vector<4x256xf32>
      %c16_i32 = arith.constant 16 : i32
      %18 = tpu.dynamic_rotate %13 by %c16_i32 dim 1 : vector<4x256xf32>, i32 -> vector<4x256xf32>
      %c1 = arith.constant 1 : index
      %c0_9 = arith.constant 0 : index
      %19 = vector.load %arg3[%c1, %c0_9] : memref<9x256xf32, #tpu.memory_space<vmem>>, vector<1x256xf32>
      %20 = vector.broadcast %19 : vector<1x256xf32> to vector<4x256xf32>
      %21 = arith.mulf %18, %20 : vector<4x256xf32>
      %c15_i32 = arith.constant 15 : i32
      %22 = tpu.dynamic_rotate %13 by %c15_i32 dim 1 : vector<4x256xf32>, i32 -> vector<4x256xf32>
      %c2 = arith.constant 2 : index
      %c0_10 = arith.constant 0 : index
      %23 = vector.load %arg3[%c2, %c0_10] : memref<9x256xf32, #tpu.memory_space<vmem>>, vector<1x256xf32>
      %24 = vector.broadcast %23 : vector<1x256xf32> to vector<4x256xf32>
      %25 = arith.mulf %22, %24 : vector<4x256xf32>
      %c1_i32_11 = arith.constant 1 : i32
      %26 = tpu.dynamic_rotate %13 by %c1_i32_11 dim 1 : vector<4x256xf32>, i32 -> vector<4x256xf32>
      %c3 = arith.constant 3 : index
      %c0_12 = arith.constant 0 : index
      %27 = vector.load %arg3[%c3, %c0_12] : memref<9x256xf32, #tpu.memory_space<vmem>>, vector<1x256xf32>
      %28 = vector.broadcast %27 : vector<1x256xf32> to vector<4x256xf32>
      %29 = arith.mulf %26, %28 : vector<4x256xf32>
      %c255_i32 = arith.constant 255 : i32
      %30 = tpu.dynamic_rotate %13 by %c255_i32 dim 1 : vector<4x256xf32>, i32 -> vector<4x256xf32>
      %c5 = arith.constant 5 : index
      %c0_13 = arith.constant 0 : index
      %31 = vector.load %arg3[%c5, %c0_13] : memref<9x256xf32, #tpu.memory_space<vmem>>, vector<1x256xf32>
      %32 = vector.broadcast %31 : vector<1x256xf32> to vector<4x256xf32>
      %33 = arith.mulf %30, %32 : vector<4x256xf32>
      %c241_i32 = arith.constant 241 : i32
      %34 = tpu.dynamic_rotate %13 by %c241_i32 dim 1 : vector<4x256xf32>, i32 -> vector<4x256xf32>
      %c6 = arith.constant 6 : index
      %c0_14 = arith.constant 0 : index
      %35 = vector.load %arg3[%c6, %c0_14] : memref<9x256xf32, #tpu.memory_space<vmem>>, vector<1x256xf32>
      %36 = vector.broadcast %35 : vector<1x256xf32> to vector<4x256xf32>
      %37 = arith.mulf %34, %36 : vector<4x256xf32>
      %c240_i32 = arith.constant 240 : i32
      %38 = tpu.dynamic_rotate %13 by %c240_i32 dim 1 : vector<4x256xf32>, i32 -> vector<4x256xf32>
      %c7 = arith.constant 7 : index
      %c0_15 = arith.constant 0 : index
      %39 = vector.load %arg3[%c7, %c0_15] : memref<9x256xf32, #tpu.memory_space<vmem>>, vector<1x256xf32>
      %40 = vector.broadcast %39 : vector<1x256xf32> to vector<4x256xf32>
      %41 = arith.mulf %38, %40 : vector<4x256xf32>
      %c239_i32 = arith.constant 239 : i32
      %42 = tpu.dynamic_rotate %13 by %c239_i32 dim 1 : vector<4x256xf32>, i32 -> vector<4x256xf32>
      %c8 = arith.constant 8 : index
      %c0_16 = arith.constant 0 : index
      %43 = vector.load %arg3[%c8, %c0_16] : memref<9x256xf32, #tpu.memory_space<vmem>>, vector<1x256xf32>
      %44 = vector.broadcast %43 : vector<1x256xf32> to vector<4x256xf32>
      %45 = arith.mulf %42, %44 : vector<4x256xf32>
      %46 = tpu.concatenate %17, %21, %25, %29, %13, %33, %37, %41, %45 in 0 : vector<4x256xf32>, vector<4x256xf32>, vector<4x256xf32>, vector<4x256xf32>, vector<4x256xf32>, vector<4x256xf32>, vector<4x256xf32>, vector<4x256xf32>, vector<4x256xf32> -> vector<36x256xf32>
      %c0_17 = arith.constant 0 : index
      %c0_18 = arith.constant 0 : index
      %47 = vector.load %arg4[%c0_17, %c0_18] : memref<8x36xf32, #tpu.memory_space<vmem>>, vector<8x36xf32>
      %cst = arith.constant dense<0.000000e+00> : vector<8x256xf32>
      %48 = tpu.matmul %47, %46, %cst {dimension_numbers = #tpu.dot_dimension_numbers<[1], [0], [0], [1], [0, 0, 1, 1], [], []>} : vector<8x36xf32>, vector<36x256xf32>, vector<8x256xf32> -> vector<8x256xf32>
      %c0_19 = arith.constant 0 : index
      %c0_20 = arith.constant 0 : index
      %49 = vector.load %arg5[%c0_19, %c0_20] : memref<8x1xf32, #tpu.memory_space<vmem>>, vector<8x1xf32>
      %50 = vector.broadcast %49 : vector<8x1xf32> to vector<8x256xf32>
      %51 = arith.addf %48, %50 : vector<8x256xf32>
      %52 = arith.index_cast %arg1 : i32 to index
      %c0_21 = arith.constant 0 : index
      %c0_22 = arith.constant 0 : index
      %53 = vector.load %arg13[%52, %c0_21, %c0_22] : memref<2x8x256xf32, #tpu.memory_space<vmem>>, vector<1x8x256xf32>
      %54 = vector.shape_cast %53 : vector<1x8x256xf32> to vector<8x256xf32>
      %55 = vector.shape_cast %51 : vector<8x256xf32> to vector<1x8x256xf32>
      tpu.vector_store %arg13[%52, %c0_21, %c0_22], %55 {strides = array<i32>} : memref<2x8x256xf32, #tpu.memory_space<vmem>>, vector<1x8x256xf32>,
      %c0_23 = arith.constant 0 : index
      %c0_24 = arith.constant 0 : index
      %56 = vector.load %arg14[%c0_23, %c0_24] : memref<8x1xf32, #tpu.memory_space<vmem>>, vector<8x1xf32>
      %cst_25 = arith.constant dense<0.000000e+00> : vector<8xf32>
      %57 = vector.multi_reduction <add>, %51, %cst_25 [1] : vector<8x256xf32> to vector<8xf32>
      %58 = vector.shape_cast %57 : vector<8xf32> to vector<8x1xf32>
      %59 = arith.addf %56, %58 : vector<8x1xf32>
      %c0_26 = arith.constant 0 : index
      %c0_27 = arith.constant 0 : index
      %60 = vector.load %arg14[%c0_26, %c0_27] : memref<8x1xf32, #tpu.memory_space<vmem>>, vector<8x1xf32>
      tpu.vector_store %arg14[%c0_26, %c0_27], %59 {strides = array<i32>} : memref<8x1xf32, #tpu.memory_space<vmem>>, vector<8x1xf32>,
      %c0_28 = arith.constant 0 : index
      %c0_29 = arith.constant 0 : index
      %61 = vector.load %arg15[%c0_28, %c0_29] : memref<8x1xf32, #tpu.memory_space<vmem>>, vector<8x1xf32>
      %62 = arith.mulf %51, %51 : vector<8x256xf32>
      %cst_30 = arith.constant dense<0.000000e+00> : vector<8xf32>
      %63 = vector.multi_reduction <add>, %62, %cst_30 [1] : vector<8x256xf32> to vector<8xf32>
      %64 = vector.shape_cast %63 : vector<8xf32> to vector<8x1xf32>
      %65 = arith.addf %61, %64 : vector<8x1xf32>
      %c0_31 = arith.constant 0 : index
      %c0_32 = arith.constant 0 : index
      %66 = vector.load %arg15[%c0_31, %c0_32] : memref<8x1xf32, #tpu.memory_space<vmem>>, vector<8x1xf32>
      tpu.vector_store %arg15[%c0_31, %c0_32], %65 {strides = array<i32>} : memref<8x1xf32, #tpu.memory_space<vmem>>, vector<8x1xf32>,
    } else {
    }
    %c1_i32 = arith.constant 1 : i32
    %3 = arith.cmpi eq, %arg0, %c1_i32 : i32
    %4 = arith.extui %3 : i1 to i32
    %c0_i32_1 = arith.constant 0 : i32
    %5 = arith.cmpi ne, %4, %c0_i32_1 : i32
    scf.if %5 {
      %c0_i32_3 = arith.constant 0 : i32
      %9 = arith.cmpi eq, %arg1, %c0_i32_3 : i32
      %10 = arith.extui %9 : i1 to i32
      %c0_i32_4 = arith.constant 0 : i32
      %11 = arith.cmpi ne, %10, %c0_i32_4 : i32
      scf.if %11 {
        %c0_37 = arith.constant 0 : index
        %c0_38 = arith.constant 0 : index
        %76 = vector.load %arg14[%c0_37, %c0_38] : memref<8x1xf32, #tpu.memory_space<vmem>>, vector<8x1xf32>
        %cst_39 = arith.constant 0.001953125 : f32
        %77 = vector.broadcast %cst_39 : f32 to vector<8x1xf32>
        %78 = arith.mulf %76, %77 : vector<8x1xf32>
        %c0_40 = arith.constant 0 : index
        %c0_41 = arith.constant 0 : index
        %79 = vector.load %arg15[%c0_40, %c0_41] : memref<8x1xf32, #tpu.memory_space<vmem>>, vector<8x1xf32>
        %cst_42 = arith.constant 0.001953125 : f32
        %80 = vector.broadcast %cst_42 : f32 to vector<8x1xf32>
        %81 = arith.mulf %79, %80 : vector<8x1xf32>
        %82 = arith.mulf %78, %78 : vector<8x1xf32>
        %83 = arith.subf %81, %82 : vector<8x1xf32>
        %c0_43 = arith.constant 0 : index
        %c0_44 = arith.constant 0 : index
        %84 = vector.load %arg6[%c0_43, %c0_44] : memref<8x1xf32, #tpu.memory_space<vmem>>, vector<8x1xf32>
        %cst_45 = arith.constant 9.99999974E-6 : f32
        %85 = vector.broadcast %cst_45 : f32 to vector<8x1xf32>
        %86 = arith.addf %83, %85 : vector<8x1xf32>
        %87 = math.rsqrt %86 : vector<8x1xf32>
        %88 = arith.mulf %84, %87 : vector<8x1xf32>
        %c0_46 = arith.constant 0 : index
        %c0_47 = arith.constant 0 : index
        %89 = vector.load %arg16[%c0_46, %c0_47] : memref<8x1xf32, #tpu.memory_space<vmem>>, vector<8x1xf32>
        tpu.vector_store %arg16[%c0_46, %c0_47], %88 {strides = array<i32>} : memref<8x1xf32, #tpu.memory_space<vmem>>, vector<8x1xf32>,
        %c0_48 = arith.constant 0 : index
        %c0_49 = arith.constant 0 : index
        %90 = vector.load %arg7[%c0_48, %c0_49] : memref<8x1xf32, #tpu.memory_space<vmem>>, vector<8x1xf32>
        %91 = arith.mulf %78, %88 : vector<8x1xf32>
        %92 = arith.subf %90, %91 : vector<8x1xf32>
        %c0_50 = arith.constant 0 : index
        %c0_51 = arith.constant 0 : index
        %93 = vector.load %arg17[%c0_50, %c0_51] : memref<8x1xf32, #tpu.memory_space<vmem>>, vector<8x1xf32>
        tpu.vector_store %arg17[%c0_50, %c0_51], %92 {strides = array<i32>} : memref<8x1xf32, #tpu.memory_space<vmem>>, vector<8x1xf32>,
        %cst_52 = arith.constant 0.000000e+00 : f32
        %94 = vector.broadcast %cst_52 : f32 to vector<8x1xf32>
        %c0_53 = arith.constant 0 : index
        %c0_54 = arith.constant 0 : index
        %95 = vector.load %arg14[%c0_53, %c0_54] : memref<8x1xf32, #tpu.memory_space<vmem>>, vector<8x1xf32>
        tpu.vector_store %arg14[%c0_53, %c0_54], %94 {strides = array<i32>} : memref<8x1xf32, #tpu.memory_space<vmem>>, vector<8x1xf32>,
        %cst_55 = arith.constant 0.000000e+00 : f32
        %96 = vector.broadcast %cst_55 : f32 to vector<8x1xf32>
        %c0_56 = arith.constant 0 : index
        %c0_57 = arith.constant 0 : index
        %97 = vector.load %arg15[%c0_56, %c0_57] : memref<8x1xf32, #tpu.memory_space<vmem>>, vector<8x1xf32>
        tpu.vector_store %arg15[%c0_56, %c0_57], %96 {strides = array<i32>} : memref<8x1xf32, #tpu.memory_space<vmem>>, vector<8x1xf32>,
      } else {
      }
      %12 = arith.index_cast %arg1 : i32 to index
      %c0 = arith.constant 0 : index
      %c0_5 = arith.constant 0 : index
      %13 = vector.load %arg13[%12, %c0, %c0_5] : memref<2x8x256xf32, #tpu.memory_space<vmem>>, vector<1x8x256xf32>
      %14 = vector.shape_cast %13 : vector<1x8x256xf32> to vector<8x256xf32>
      %c0_6 = arith.constant 0 : index
      %c0_7 = arith.constant 0 : index
      %15 = vector.load %arg16[%c0_6, %c0_7] : memref<8x1xf32, #tpu.memory_space<vmem>>, vector<8x1xf32>
      %16 = vector.broadcast %15 : vector<8x1xf32> to vector<8x256xf32>
      %17 = arith.mulf %14, %16 : vector<8x256xf32>
      %c0_8 = arith.constant 0 : index
      %c0_9 = arith.constant 0 : index
      %18 = vector.load %arg17[%c0_8, %c0_9] : memref<8x1xf32, #tpu.memory_space<vmem>>, vector<8x1xf32>
      %19 = vector.broadcast %18 : vector<8x1xf32> to vector<8x256xf32>
      %20 = arith.addf %17, %19 : vector<8x256xf32>
      %cst = arith.constant 0.000000e+00 : f32
      %21 = vector.broadcast %cst : f32 to vector<8x256xf32>
      %22 = arith.maximumf %20, %21 : vector<8x256xf32>
      %c17_i32 = arith.constant 17 : i32
      %23 = tpu.dynamic_rotate %22 by %c17_i32 dim 1 : vector<8x256xf32>, i32 -> vector<8x256xf32>
      %c0_10 = arith.constant 0 : index
      %c0_11 = arith.constant 0 : index
      %24 = vector.load %arg3[%c0_10, %c0_11] : memref<9x256xf32, #tpu.memory_space<vmem>>, vector<1x256xf32>
      %25 = vector.broadcast %24 : vector<1x256xf32> to vector<8x256xf32>
      %26 = arith.mulf %23, %25 : vector<8x256xf32>
      %c16_i32 = arith.constant 16 : i32
      %27 = tpu.dynamic_rotate %22 by %c16_i32 dim 1 : vector<8x256xf32>, i32 -> vector<8x256xf32>
      %c1 = arith.constant 1 : index
      %c0_12 = arith.constant 0 : index
      %28 = vector.load %arg3[%c1, %c0_12] : memref<9x256xf32, #tpu.memory_space<vmem>>, vector<1x256xf32>
      %29 = vector.broadcast %28 : vector<1x256xf32> to vector<8x256xf32>
      %30 = arith.mulf %27, %29 : vector<8x256xf32>
      %c15_i32 = arith.constant 15 : i32
      %31 = tpu.dynamic_rotate %22 by %c15_i32 dim 1 : vector<8x256xf32>, i32 -> vector<8x256xf32>
      %c2 = arith.constant 2 : index
      %c0_13 = arith.constant 0 : index
      %32 = vector.load %arg3[%c2, %c0_13] : memref<9x256xf32, #tpu.memory_space<vmem>>, vector<1x256xf32>
      %33 = vector.broadcast %32 : vector<1x256xf32> to vector<8x256xf32>
      %34 = arith.mulf %31, %33 : vector<8x256xf32>
      %c1_i32_14 = arith.constant 1 : i32
      %35 = tpu.dynamic_rotate %22 by %c1_i32_14 dim 1 : vector<8x256xf32>, i32 -> vector<8x256xf32>
      %c3 = arith.constant 3 : index
      %c0_15 = arith.constant 0 : index
      %36 = vector.load %arg3[%c3, %c0_15] : memref<9x256xf32, #tpu.memory_space<vmem>>, vector<1x256xf32>
      %37 = vector.broadcast %36 : vector<1x256xf32> to vector<8x256xf32>
      %38 = arith.mulf %35, %37 : vector<8x256xf32>
      %c255_i32 = arith.constant 255 : i32
      %39 = tpu.dynamic_rotate %22 by %c255_i32 dim 1 : vector<8x256xf32>, i32 -> vector<8x256xf32>
      %c5 = arith.constant 5 : index
      %c0_16 = arith.constant 0 : index
      %40 = vector.load %arg3[%c5, %c0_16] : memref<9x256xf32, #tpu.memory_space<vmem>>, vector<1x256xf32>
      %41 = vector.broadcast %40 : vector<1x256xf32> to vector<8x256xf32>
      %42 = arith.mulf %39, %41 : vector<8x256xf32>
      %c241_i32 = arith.constant 241 : i32
      %43 = tpu.dynamic_rotate %22 by %c241_i32 dim 1 : vector<8x256xf32>, i32 -> vector<8x256xf32>
      %c6 = arith.constant 6 : index
      %c0_17 = arith.constant 0 : index
      %44 = vector.load %arg3[%c6, %c0_17] : memref<9x256xf32, #tpu.memory_space<vmem>>, vector<1x256xf32>
      %45 = vector.broadcast %44 : vector<1x256xf32> to vector<8x256xf32>
      %46 = arith.mulf %43, %45 : vector<8x256xf32>
      %c240_i32 = arith.constant 240 : i32
      %47 = tpu.dynamic_rotate %22 by %c240_i32 dim 1 : vector<8x256xf32>, i32 -> vector<8x256xf32>
      %c7 = arith.constant 7 : index
      %c0_18 = arith.constant 0 : index
      %48 = vector.load %arg3[%c7, %c0_18] : memref<9x256xf32, #tpu.memory_space<vmem>>, vector<1x256xf32>
      %49 = vector.broadcast %48 : vector<1x256xf32> to vector<8x256xf32>
      %50 = arith.mulf %47, %49 : vector<8x256xf32>
      %c239_i32 = arith.constant 239 : i32
      %51 = tpu.dynamic_rotate %22 by %c239_i32 dim 1 : vector<8x256xf32>, i32 -> vector<8x256xf32>
      %c8 = arith.constant 8 : index
      %c0_19 = arith.constant 0 : index
      %52 = vector.load %arg3[%c8, %c0_19] : memref<9x256xf32, #tpu.memory_space<vmem>>, vector<1x256xf32>
      %53 = vector.broadcast %52 : vector<1x256xf32> to vector<8x256xf32>
      %54 = arith.mulf %51, %53 : vector<8x256xf32>
      %55 = tpu.concatenate %26, %30, %34, %38, %22, %42, %46, %50, %54 in 0 : vector<8x256xf32>, vector<8x256xf32>, vector<8x256xf32>, vector<8x256xf32>, vector<8x256xf32>, vector<8x256xf32>, vector<8x256xf32>, vector<8x256xf32>, vector<8x256xf32> -> vector<72x256xf32>
      %c0_20 = arith.constant 0 : index
      %c0_21 = arith.constant 0 : index
      %56 = vector.load %arg8[%c0_20, %c0_21] : memref<8x72xf32, #tpu.memory_space<vmem>>, vector<8x72xf32>
      %cst_22 = arith.constant dense<0.000000e+00> : vector<8x256xf32>
      %57 = tpu.matmul %56, %55, %cst_22 {dimension_numbers = #tpu.dot_dimension_numbers<[1], [0], [0], [1], [0, 0, 1, 1], [], []>} : vector<8x72xf32>, vector<72x256xf32>, vector<8x256xf32> -> vector<8x256xf32>
      %c0_23 = arith.constant 0 : index
      %c0_24 = arith.constant 0 : index
      %58 = vector.load %arg9[%c0_23, %c0_24] : memref<8x1xf32, #tpu.memory_space<vmem>>, vector<8x1xf32>
      %59 = vector.broadcast %58 : vector<8x1xf32> to vector<8x256xf32>
      %60 = arith.addf %57, %59 : vector<8x256xf32>
      %61 = arith.index_cast %arg1 : i32 to index
      %c0_25 = arith.constant 0 : index
      %c0_26 = arith.constant 0 : index
      %62 = vector.load %arg13[%61, %c0_25, %c0_26] : memref<2x8x256xf32, #tpu.memory_space<vmem>>, vector<1x8x256xf32>
      %63 = vector.shape_cast %62 : vector<1x8x256xf32> to vector<8x256xf32>
      %64 = vector.shape_cast %60 : vector<8x256xf32> to vector<1x8x256xf32>
      tpu.vector_store %arg13[%61, %c0_25, %c0_26], %64 {strides = array<i32>} : memref<2x8x256xf32, #tpu.memory_space<vmem>>, vector<1x8x256xf32>,
      %c0_27 = arith.constant 0 : index
      %c0_28 = arith.constant 0 : index
      %65 = vector.load %arg14[%c0_27, %c0_28] : memref<8x1xf32, #tpu.memory_space<vmem>>, vector<8x1xf32>
      %cst_29 = arith.constant dense<0.000000e+00> : vector<8xf32>
      %66 = vector.multi_reduction <add>, %60, %cst_29 [1] : vector<8x256xf32> to vector<8xf32>
      %67 = vector.shape_cast %66 : vector<8xf32> to vector<8x1xf32>
      %68 = arith.addf %65, %67 : vector<8x1xf32>
      %c0_30 = arith.constant 0 : index
      %c0_31 = arith.constant 0 : index
      %69 = vector.load %arg14[%c0_30, %c0_31] : memref<8x1xf32, #tpu.memory_space<vmem>>, vector<8x1xf32>
      tpu.vector_store %arg14[%c0_30, %c0_31], %68 {strides = array<i32>} : memref<8x1xf32, #tpu.memory_space<vmem>>, vector<8x1xf32>,
      %c0_32 = arith.constant 0 : index
      %c0_33 = arith.constant 0 : index
      %70 = vector.load %arg15[%c0_32, %c0_33] : memref<8x1xf32, #tpu.memory_space<vmem>>, vector<8x1xf32>
      %71 = arith.mulf %60, %60 : vector<8x256xf32>
      %cst_34 = arith.constant dense<0.000000e+00> : vector<8xf32>
      %72 = vector.multi_reduction <add>, %71, %cst_34 [1] : vector<8x256xf32> to vector<8xf32>
      %73 = vector.shape_cast %72 : vector<8xf32> to vector<8x1xf32>
      %74 = arith.addf %70, %73 : vector<8x1xf32>
      %c0_35 = arith.constant 0 : index
      %c0_36 = arith.constant 0 : index
      %75 = vector.load %arg15[%c0_35, %c0_36] : memref<8x1xf32, #tpu.memory_space<vmem>>, vector<8x1xf32>
      tpu.vector_store %arg15[%c0_35, %c0_36], %74 {strides = array<i32>} : memref<8x1xf32, #tpu.memory_space<vmem>>, vector<8x1xf32>,
    } else {
    }
    %c2_i32 = arith.constant 2 : i32
    %6 = arith.cmpi eq, %arg0, %c2_i32 : i32
    %7 = arith.extui %6 : i1 to i32
    %c0_i32_2 = arith.constant 0 : i32
    %8 = arith.cmpi ne, %7, %c0_i32_2 : i32
    scf.if %8 {
      %c0_i32_3 = arith.constant 0 : i32
      %9 = arith.cmpi eq, %arg1, %c0_i32_3 : i32
      %10 = arith.extui %9 : i1 to i32
      %c0_i32_4 = arith.constant 0 : i32
      %11 = arith.cmpi ne, %10, %c0_i32_4 : i32
      scf.if %11 {
        %c0_13 = arith.constant 0 : index
        %c0_14 = arith.constant 0 : index
        %26 = vector.load %arg14[%c0_13, %c0_14] : memref<8x1xf32, #tpu.memory_space<vmem>>, vector<8x1xf32>
        %cst_15 = arith.constant 0.001953125 : f32
        %27 = vector.broadcast %cst_15 : f32 to vector<8x1xf32>
        %28 = arith.mulf %26, %27 : vector<8x1xf32>
        %c0_16 = arith.constant 0 : index
        %c0_17 = arith.constant 0 : index
        %29 = vector.load %arg15[%c0_16, %c0_17] : memref<8x1xf32, #tpu.memory_space<vmem>>, vector<8x1xf32>
        %cst_18 = arith.constant 0.001953125 : f32
        %30 = vector.broadcast %cst_18 : f32 to vector<8x1xf32>
        %31 = arith.mulf %29, %30 : vector<8x1xf32>
        %32 = arith.mulf %28, %28 : vector<8x1xf32>
        %33 = arith.subf %31, %32 : vector<8x1xf32>
        %c0_19 = arith.constant 0 : index
        %c0_20 = arith.constant 0 : index
        %34 = vector.load %arg10[%c0_19, %c0_20] : memref<8x1xf32, #tpu.memory_space<vmem>>, vector<8x1xf32>
        %cst_21 = arith.constant 9.99999974E-6 : f32
        %35 = vector.broadcast %cst_21 : f32 to vector<8x1xf32>
        %36 = arith.addf %33, %35 : vector<8x1xf32>
        %37 = math.rsqrt %36 : vector<8x1xf32>
        %38 = arith.mulf %34, %37 : vector<8x1xf32>
        %c0_22 = arith.constant 0 : index
        %c0_23 = arith.constant 0 : index
        %39 = vector.load %arg16[%c0_22, %c0_23] : memref<8x1xf32, #tpu.memory_space<vmem>>, vector<8x1xf32>
        tpu.vector_store %arg16[%c0_22, %c0_23], %38 {strides = array<i32>} : memref<8x1xf32, #tpu.memory_space<vmem>>, vector<8x1xf32>,
        %c0_24 = arith.constant 0 : index
        %c0_25 = arith.constant 0 : index
        %40 = vector.load %arg11[%c0_24, %c0_25] : memref<8x1xf32, #tpu.memory_space<vmem>>, vector<8x1xf32>
        %41 = arith.mulf %28, %38 : vector<8x1xf32>
        %42 = arith.subf %40, %41 : vector<8x1xf32>
        %c0_26 = arith.constant 0 : index
        %c0_27 = arith.constant 0 : index
        %43 = vector.load %arg17[%c0_26, %c0_27] : memref<8x1xf32, #tpu.memory_space<vmem>>, vector<8x1xf32>
        tpu.vector_store %arg17[%c0_26, %c0_27], %42 {strides = array<i32>} : memref<8x1xf32, #tpu.memory_space<vmem>>, vector<8x1xf32>,
        %cst_28 = arith.constant 0.000000e+00 : f32
        %44 = vector.broadcast %cst_28 : f32 to vector<8x1xf32>
        %c0_29 = arith.constant 0 : index
        %c0_30 = arith.constant 0 : index
        %45 = vector.load %arg14[%c0_29, %c0_30] : memref<8x1xf32, #tpu.memory_space<vmem>>, vector<8x1xf32>
        tpu.vector_store %arg14[%c0_29, %c0_30], %44 {strides = array<i32>} : memref<8x1xf32, #tpu.memory_space<vmem>>, vector<8x1xf32>,
        %cst_31 = arith.constant 0.000000e+00 : f32
        %46 = vector.broadcast %cst_31 : f32 to vector<8x1xf32>
        %c0_32 = arith.constant 0 : index
        %c0_33 = arith.constant 0 : index
        %47 = vector.load %arg15[%c0_32, %c0_33] : memref<8x1xf32, #tpu.memory_space<vmem>>, vector<8x1xf32>
        tpu.vector_store %arg15[%c0_32, %c0_33], %46 {strides = array<i32>} : memref<8x1xf32, #tpu.memory_space<vmem>>, vector<8x1xf32>,
      } else {
      }
      %12 = arith.index_cast %arg1 : i32 to index
      %c0 = arith.constant 0 : index
      %c0_5 = arith.constant 0 : index
      %13 = vector.load %arg13[%12, %c0, %c0_5] : memref<2x8x256xf32, #tpu.memory_space<vmem>>, vector<1x8x256xf32>
      %14 = vector.shape_cast %13 : vector<1x8x256xf32> to vector<8x256xf32>
      %c0_6 = arith.constant 0 : index
      %c0_7 = arith.constant 0 : index
      %15 = vector.load %arg16[%c0_6, %c0_7] : memref<8x1xf32, #tpu.memory_space<vmem>>, vector<8x1xf32>
      %16 = vector.broadcast %15 : vector<8x1xf32> to vector<8x256xf32>
      %17 = arith.mulf %14, %16 : vector<8x256xf32>
      %c0_8 = arith.constant 0 : index
      %c0_9 = arith.constant 0 : index
      %18 = vector.load %arg17[%c0_8, %c0_9] : memref<8x1xf32, #tpu.memory_space<vmem>>, vector<8x1xf32>
      %19 = vector.broadcast %18 : vector<8x1xf32> to vector<8x256xf32>
      %20 = arith.addf %17, %19 : vector<8x256xf32>
      %cst = arith.constant 0.000000e+00 : f32
      %21 = vector.broadcast %cst : f32 to vector<8x256xf32>
      %22 = arith.maximumf %20, %21 : vector<8x256xf32>
      %c0_10 = arith.constant 0 : index
      %c0_11 = arith.constant 0 : index
      %c0_12 = arith.constant 0 : index
      %23 = vector.load %arg12[%c0_10, %c0_11, %c0_12] : memref<1x8x256xf32, #tpu.memory_space<vmem>>, vector<1x8x256xf32>
      %24 = vector.shape_cast %23 : vector<1x8x256xf32> to vector<8x256xf32>
      %25 = vector.shape_cast %22 : vector<8x256xf32> to vector<1x8x256xf32>
      tpu.vector_store %arg12[%c0_10, %c0_11, %c0_12], %25 {strides = array<i32>} : memref<1x8x256xf32, #tpu.memory_space<vmem>>, vector<1x8x256xf32>,
    } else {
    }
    return
  }
  func.func @transform_0(%arg0: i32, %arg1: i32) -> (i32, i32, i32) {
    %c0_i32 = arith.constant 0 : i32
    %0 = arith.cmpi eq, %arg0, %c0_i32 : i32
    %c0_i32_0 = arith.constant 0 : i32
    %1 = arith.select %0, %arg1, %c0_i32_0 : i32
    %c0_i32_1 = arith.constant 0 : i32
    %c0_i32_2 = arith.constant 0 : i32
    %c0_i32_3 = arith.constant 0 : i32
    return %1, %c0_i32_1, %c0_i32_2 : i32, i32, i32
  }
  func.func @transform_1(%arg0: i32, %arg1: i32) -> (i32, i32) {
    %c0_i32 = arith.constant 0 : i32
    %c0_i32_0 = arith.constant 0 : i32
    %c0_i32_1 = arith.constant 0 : i32
    return %c0_i32, %c0_i32_0 : i32, i32
  }
  func.func @transform_2(%arg0: i32, %arg1: i32) -> (i32, i32) {
    %c0_i32 = arith.constant 0 : i32
    %c0_i32_0 = arith.constant 0 : i32
    %c0_i32_1 = arith.constant 0 : i32
    return %c0_i32, %c0_i32_0 : i32, i32
  }
  func.func @transform_3(%arg0: i32, %arg1: i32) -> (i32, i32) {
    %c0_i32 = arith.constant 0 : i32
    %c0_i32_0 = arith.constant 0 : i32
    %c0_i32_1 = arith.constant 0 : i32
    return %c0_i32, %c0_i32_0 : i32, i32
  }
  func.func @transform_4(%arg0: i32, %arg1: i32) -> (i32, i32) {
    %c0_i32 = arith.constant 0 : i32
    %c0_i32_0 = arith.constant 0 : i32
    %c0_i32_1 = arith.constant 0 : i32
    return %c0_i32, %c0_i32_0 : i32, i32
  }
  func.func @transform_5(%arg0: i32, %arg1: i32) -> (i32, i32) {
    %c0_i32 = arith.constant 0 : i32
    %c0_i32_0 = arith.constant 0 : i32
    %c0_i32_1 = arith.constant 0 : i32
    return %c0_i32, %c0_i32_0 : i32, i32
  }
  func.func @transform_6(%arg0: i32, %arg1: i32) -> (i32, i32) {
    %c0_i32 = arith.constant 0 : i32
    %c0_i32_0 = arith.constant 0 : i32
    %c0_i32_1 = arith.constant 0 : i32
    return %c0_i32, %c0_i32_0 : i32, i32
  }
  func.func @transform_7(%arg0: i32, %arg1: i32) -> (i32, i32) {
    %c0_i32 = arith.constant 0 : i32
    %c0_i32_0 = arith.constant 0 : i32
    %c0_i32_1 = arith.constant 0 : i32
    return %c0_i32, %c0_i32_0 : i32, i32
  }
  func.func @transform_8(%arg0: i32, %arg1: i32) -> (i32, i32) {
    %c0_i32 = arith.constant 0 : i32
    %c0_i32_0 = arith.constant 0 : i32
    %c0_i32_1 = arith.constant 0 : i32
    return %c0_i32, %c0_i32_0 : i32, i32
  }
  func.func @transform_9(%arg0: i32, %arg1: i32) -> (i32, i32) {
    %c0_i32 = arith.constant 0 : i32
    %c0_i32_0 = arith.constant 0 : i32
    %c0_i32_1 = arith.constant 0 : i32
    return %c0_i32, %c0_i32_0 : i32, i32
  }
  func.func @transform_10(%arg0: i32, %arg1: i32) -> (i32, i32, i32) {
    %c2_i32 = arith.constant 2 : i32
    %0 = arith.cmpi eq, %arg0, %c2_i32 : i32
    %c0_i32 = arith.constant 0 : i32
    %1 = arith.select %0, %arg1, %c0_i32 : i32
    %c0_i32_0 = arith.constant 0 : i32
    %c0_i32_1 = arith.constant 0 : i32
    %c0_i32_2 = arith.constant 0 : i32
    return %1, %c0_i32_0, %c0_i32_1 : i32, i32, i32
  }
}

</mosaic_0001>

<bundles_post_ra>
// kernel: conv_block_forward.1
= control target key start
LH: loop header
LB: loop body
LE: loop exit
PB: predicated region body
PF: predicated region fallthrough
CT: control target
= control target key end

     0   :  { %s1445_s13 = smov 0   ;;  %s1447_s14 = smov 0   ;;  %s1731_s0 = inlined_call_operand.vmem [shape: f32[2,4,256], index: 0, kind: input, shape index: {}]   ;;  %s1732_s1 = inlined_call_operand.vmem [shape: f32[9,256], index: 1, kind: input, shape index: {}]   ;;  %s1733_s2 = inlined_call_operand.vmem [shape: f32[8,36], index: 2, kind: input, shape index: {}]   ;;  %s1734_s3 = inlined_call_operand.vmem [shape: f32[8,1], index: 3, kind: input, shape index: {}]   ;;  %s1735_s4 = inlined_call_operand.vmem [shape: f32[8,1], index: 4, kind: input, shape index: {}]   ;;  %s1736_s5 = inlined_call_operand.vmem [shape: f32[8,1], index: 5, kind: input, shape index: {}]   ;;  %s1737_s6 = inlined_call_operand.vmem [shape: f32[8,72], index: 6, kind: input, shape index: {}]   ;;  %s1738_s7 = inlined_call_operand.vmem [shape: f32[8,1], index: 7, kind: input, shape index: {}]   ;;  %s1739_s8 = inlined_call_operand.vmem [shape: f32[8,1], index: 8, kind: input, shape index: {}]   ;;  %s1740_s9 = inlined_call_operand.vmem [shape: f32[8,1], index: 9, kind: input, shape index: {}]   ;;  %s1741_s10 = inlined_call_operand.vmem [shape: f32[2,8,256], index: 10, kind: output, shape index: {}]  }
   0x1   :  { %s1449_s15 = smov 0   ;;  %s1451_s16 = smov 0  }
   0x2   :  { %s1453_s17 = smov 0  }
   0x3 LB: > { %s29_s18 = sadd.s32 1, %s1356_s15  ;;  %s32_s19 = sadd.s32 1, %s1360_s16  ;;  %s1364_s17 = sphi %s1453_s17, %s20_s17   ;;  %s1360_s16 = sphi %s1451_s16, %s1745_s16   ;;  %s1356_s15 = sphi %s1449_s15, %s1744_s15   ;;  %s1352_s14 = sphi %s1447_s14, %s1743_s14   ;;  %s1348_s13 = sphi %s1445_s13, %s1742_s13  }
   0x4   : > { %p30_p0 = scmp.ge.s32.totalorder %s29_s18, 2  ;;  %p1188_p1 = scmp.ge.s32.totalorder %s1364_s17, 1 }
   0x5   : > { %p336_p2 = scmp.lt.s32.totalorder %s1364_s17, 7 }
   0x6   : > { %s1747_s18 = smov (%p30_p0, %s29_s18), 0  ;;  %s1749_s19 = smov (!%p30_p0, %s32_s19), %s1360_s16 }
   0x7   : > { %p337_p3 = pnand %p1188_p1, %p336_p2  ;;  %p34_p4 = scmp.ge.s32.totalorder %s1749_s19, 3 }
   0x8   : > { %p378_p5 = scmp.eq.s32.totalorder (!%p337_p3), %s1352_s14, 0  ;;  %p387_p6 = scmp.eq.s32.totalorder (!%p337_p3), %s1352_s14, 2 }
   0x9   : > { %s1751_s19 = smov (%p34_p4, %s1749_s19), 0  ;;  %340 = sbr.rel (%p337_p3) target bundleno = 1417 (0x589), region = 60 }
   0xa   : > { %p1193_p9 = scmp.ne.s32.totalorder (!%p337_p3), %s1352_s14, 0 }
  0x10   : > { %s379_s20 = scalar_select %p378_p5, %s1348_s13, 0 }
  0x11   : > { %s388_s21 = scalar_select %p387_p6, %s1348_s13, 0 }
  0x12   : > { %p380_p7 = scmp.lt.s32.totalorder %s379_s20, 1  ;;  %399 = sbr.rel (%p1193_p9) target bundleno = 548 (0x224), region = 64 }
  0x13   : > { %p389_p8 = scmp.lt.s32.totalorder %s388_s21, 1  ;;  %p1194_p10 = scmp.ne.s32.totalorder (!%p1193_p9), %s1348_s13, 0 }
  0x14   : > { %s1753_s20 = smov (!%p380_p7, %s379_s20), 1 }
  0x15   : > { %s1755_s21 = smov (!%p389_p8, %s388_s21), 1  ;;  %s1225_s22 = sshll.u32 %s1753_s20, 3 }
  0x16   : > { %s384_s25 = scalar_lea.vmem %s1731_s0, %s1225_s22  ;;  %s1226_s26 = sshll.u32 %s1755_s21, 4 }
  0x17   : > { %s1489_s29 = scalar_lea.vmem %s1741_s10, %s1226_s26 }
  0x19   : > { %403 = sbr.rel (%p1194_p10) target bundleno = 32 (0x20), region = 68  ;;  %vm404_vm0 = vcmask (!%p1194_p10), 7168   ;;  %v1366_v0 = vmov (!%p1194_p10), 0.0  }
  0x1a   : > { %405 = vst.msk [vmem:[#allocation3] sm:$0xff] (!%p1194_p10), %vm404_vm0, %v1366_v0  ;;  %406 = vst.msk [vmem:[#allocation4] sm:$0xff] (!%p1194_p10), %vm404_vm0, %v1366_v0 }
  0x20 PF: > { %v1493_v1 = vld [vmem:[%s384_s25] sm:$0xff]  ;;  %s1367_s30 = smov 1   ;;  %s1368_s11 = smov 16   ;;  %v1373_v3 = vmov 0.0   ;;  %v1375_v4 = vmov 0   ;;  %v415_v6 = vlaneseq  ;;  %vm612_vm6 = vcmask 1043456  }
  0x21   : > { %478 = vrot.lane.b32.xlu1 %v1493_v1, %s1367_s30  ;;  %434 = vrot.lane.b32.xlu0 %v1493_v1, %s1368_s11  ;;  %v1499_v2 = vcombine.high %v1493_v1, %v1493_v1  ;;  %s1369_s12 = smov 17   ;;  %s1370_s20 = smov 15   ;;  %v622_v5 = vld [vmem:[%s1734_s3] sm:$0xff]  ;;  %vm628_vm10 = vcmask 293888   ;;  %vm719_vm11 = vcmask 7168  }
  0x22   : > { %s1371_s21 = smov 127   ;;  %s1372_s22 = smov 112   ;;  %702 = vmatprep.mubr.f32.mxu0 %v1373_v3  ;;  %1318 = vset.pattern.permute.xlu0 %v1375_v4  ;;  %v423_v7 = vshrl.u32 %v415_v6, 7  ;;  %v1518_v8 = vand.u32 127, %v415_v6 }
  0x23   : > { %s1374_s23 = smov 113   ;;  %s1376_s24 = smov 111   ;;  %v1197_v13 = vld [vmem:[%s1732_s1 + $0x3] ss:$8 sm:$0x3] }
  0x24   : > { %v1520_v11 = vsub.s32 0, %v423_v7  ;;  %v1522_v12 = vsub.s32 1, %v423_v7  ;;  %vm482_vm1 = vcmp.lt.s32.totalorder %v1518_v8, 1  ;;  %v1195_v14 = vld [vmem:[%s1732_s1 + $0x1] ss:$8 sm:$0x3] }
  0x25   : > { %480 = vrot.lane.b32.xlu1 %v1499_v2, %s1367_s30  ;;  %436 = vrot.lane.b32.xlu0 %v1499_v2, %s1368_s11  ;;  %vm438_vm2 = vcmp.lt.s32.totalorder %v1518_v8, 16  ;;  %vm417_vm3 = vcmp.lt.s32.totalorder %v1518_v8, 17  ;;  %v420_v19 = vld [vmem:[%s1732_s1] ss:$8 sm:$0x3]  ;;  %vm460_vm4 = vcmp.lt.s32.totalorder %v1518_v8, 15 }
  0x26   : > { %v491_v17 = vrot.slane %v1197_v13, %v1520_v11  ;;  %v495_v18 = vrot.slane %v1197_v13, %v1522_v12  ;;  %v447_v22 = vrot.slane %v1195_v14, %v1520_v11  ;;  %v451_v23 = vrot.slane %v1195_v14, %v1522_v12  ;;  %v1196_v26 = vld [vmem:[%s1732_s1 + $0x2] ss:$8 sm:$0x3]  ;;  %v1198_v43 = vld [vmem:[%s1732_s1 + $0x5] ss:$8 sm:$0x3] }
  0x27   : > { %v425_v28 = vrot.slane %v420_v19, %v1520_v11  ;;  %v429_v29 = vrot.slane %v420_v19, %v1522_v12  ;;  %v469_v37 = vrot.slane %v1196_v26, %v1520_v11  ;;  %v473_v38 = vrot.slane %v1196_v26, %v1522_v12  ;;  %v1200_v54 = vld [vmem:[%s1732_s1 + $0x7] ss:$8 sm:$0x3]  ;;  %v1201_v19 = vld [vmem:[%s1732_s1 + $0x10] ss:$8 sm:$0x3] }
  0x28   : > { %vm504_vm5 = vcmp.lt.s32.totalorder %v1518_v8, 127  ;;  %v513_v52 = vrot.slane %v1198_v43, %v1520_v11  ;;  %v517_v53 = vrot.slane %v1198_v43, %v1522_v12  ;;  %vm548_vm7 = vcmp.lt.s32.totalorder %v1518_v8, 112 }
  0x29   : > { %413 = vrot.lane.b32.xlu1 %v1499_v2, %s1369_s12  ;;  %411 = vrot.lane.b32.xlu0 %v1493_v1, %s1369_s12  ;;  %v557_v3 = vrot.slane %v1200_v54, %v1520_v11  ;;  %v561_v4 = vrot.slane %v1200_v54, %v1522_v12  ;;  %vm526_vm8 = vcmp.lt.s32.totalorder %v1518_v8, 113  ;;  %vm570_vm9 = vcmp.lt.s32.totalorder %v1518_v8, 111 }
  0x2a   : > { %v583_v26 = vrot.slane %v1201_v19, %v1522_v12 }
  0x2d   : > { %458 = vrot.lane.b32.xlu1 %v1499_v2, %s1370_s20  ;;  %456 = vrot.lane.b32.xlu0 %v1493_v1, %s1370_s20 }
  0x31   : > { %502 = vrot.lane.b32.xlu1 %v1499_v2, %s1371_s21  ;;  %500 = vrot.lane.b32.xlu0 %v1493_v1, %s1371_s21  ;;  %s1227_s21 = sshll.u32 %s1348_s13, 4 }
  0x35   : > { %546 = vrot.lane.b32.xlu1 %v1499_v2, %s1372_s22  ;;  %544 = vrot.lane.b32.xlu0 %v1493_v1, %s1372_s22  ;;  %s711_s22 = scalar_lea.vmem [#allocation2], %s1227_s21 }
  0x39   : > { %524 = vrot.lane.b32.xlu1 %v1499_v2, %s1374_s23  ;;  %522 = vrot.lane.b32.xlu0 %v1493_v1, %s1374_s23 }
  0x3d   : > { %568 = vrot.lane.b32.xlu1 %v1499_v2, %s1376_s24  ;;  %566 = vrot.lane.b32.xlu0 %v1493_v1, %s1376_s24 }
  0x41   : > { %625 = vperm.xlu0 %1318, %v622_v5   ;;  %v1199_v5 = vld [vmem:[%s1732_s1 + $0x6] ss:$8 sm:$0x3] }
  0x93   : > { %v479_v9 = vpop.permute.xlu1 %478  ;;  %v435_v10 = vpop.permute.xlu0 %434 }
  0x97   : > { %v481_v15 = vpop.permute.xlu1 %480  ;;  %v437_v16 = vpop.permute.xlu0 %436 }
  0x98   : > { %v483_v20 = vsel %vm482_vm1, %v479_v9, %v481_v15  ;;  %v484_v21 = vsel %vm482_vm1, %v481_v15, %v479_v9  ;;  %v439_v24 = vsel %vm438_vm2, %v435_v10, %v437_v16  ;;  %v440_v25 = vsel %vm438_vm2, %v437_v16, %v435_v10 }
  0x99   : > { %v498_v31 = vmul.f32 %v491_v17, %v484_v21  ;;  %v499_v32 = vmul.f32 %v495_v18, %v483_v20  ;;  %v454_v35 = vmul.f32 %v447_v22, %v440_v25  ;;  %v455_v36 = vmul.f32 %v451_v23, %v439_v24 }
  0x9a   : > { %v535_v17 = vrot.slane %v1199_v5, %v1520_v11  ;;  %v539_v18 = vrot.slane %v1199_v5, %v1522_v12 }
  0x9b   : > { %v414_v27 = vpop.permute.xlu1 %413  ;;  %v412_v30 = vpop.permute.xlu0 %411  ;;  %v596_v44 = vrot.slane %v498_v31, 4  ;;  %v597_v45 = vrot.slane %v499_v32, 4  ;;  %v590_v48 = vrot.slane %v454_v35, 4  ;;  %v591_v49 = vrot.slane %v455_v36, 4 }
  0x9c   : > { %v418_v33 = vsel %vm417_vm3, %v412_v30, %v414_v27  ;;  %v419_v34 = vsel %vm417_vm3, %v414_v27, %v412_v30  ;;  %v579_v31 = vrot.slane %v1201_v19, %v1520_v11 }
  0x9d   : > { %v432_v39 = vmul.f32 %v425_v28, %v419_v34  ;;  %v433_v40 = vmul.f32 %v429_v29, %v418_v33 }
  0x9f   : > { %v459_v41 = vpop.permute.xlu1 %458  ;;  %v457_v42 = vpop.permute.xlu0 %456  ;;  %v614_v57 = vsel %vm612_vm6, %v433_v40, %v591_v49  ;;  %v613_v59 = vsel %vm612_vm6, %v432_v39, %v590_v48  ;;  %v714_v49 = vld [vmem:[#allocation3] sm:$0xff] }
  0xa0   : > { %v461_v46 = vsel %vm460_vm4, %v457_v42, %v459_v41  ;;  %v462_v47 = vsel %vm460_vm4, %v459_v41, %v457_v42 }
  0xa1   : > { %v476_v50 = vmul.f32 %v469_v37, %v462_v47  ;;  %v477_v51 = vmul.f32 %v473_v38, %v461_v46 }
  0xa3   : > { %v503_v55 = vpop.permute.xlu1 %502  ;;  %v501_v56 = vpop.permute.xlu0 %500  ;;  %v616_v58 = vsel %vm612_vm6, %v477_v51, %v597_v45  ;;  %v615_v60 = vsel %vm612_vm6, %v476_v50, %v596_v44  ;;  %v721_v51 = vld [vmem:[#allocation4] sm:$0xff] }
  0xa4   : > { %v505_v61 = vsel %vm504_vm5, %v501_v56, %v503_v55  ;;  %v506_v62 = vsel %vm504_vm5, %v503_v55, %v501_v56  ;;  %v1230_v63 = vpack.c.bf16 %v616_v58, %v614_v57  ;;  %v1232_v0 = vpack.c.bf16 %v615_v60, %v613_v59 }
  0xa5   : > { %v520_v6 = vmul.f32 %v513_v52, %v505_v61  ;;  %v521_v7 = vmul.f32 %v517_v53, %v506_v62 }
  0xa6   : > { %1231 = vmatprep.subr.bf16.mxu0 %v1230_v63 }
  0xa7   : > { %v547_v9 = vpop.permute.xlu1 %546  ;;  %1233 = vmatpush1.bf16.msra.mxu0 %v1232_v0  ;;  %v545_v10 = vpop.permute.xlu0 %544  ;;  %v602_v20 = vrot.slane %v520_v6, 4  ;;  %v603_v21 = vrot.slane %v521_v7, 4 }
  0xa8   : > { %v549_v13 = vsel %vm548_vm7, %v545_v10, %v547_v9  ;;  %v550_v14 = vsel %vm548_vm7, %v547_v9, %v545_v10 }
  0xa9   : > { %v564_v15 = vmul.f32 %v557_v3, %v549_v13  ;;  %v565_v16 = vmul.f32 %v561_v4, %v550_v14  ;;  %v618_v33 = vsel %vm612_vm6, %v1499_v2, %v603_v21  ;;  %v617_v36 = vsel %vm612_vm6, %v1493_v1, %v602_v20  ;;  %v621_v2 = vld [vmem:[%s1733_s2] sm:$0xff] }
  0xab   : > { %v525_v22 = vpop.permute.xlu1 %524  ;;  %v523_v23 = vpop.permute.xlu0 %522  ;;  %v608_v27 = vrot.slane %v564_v15, 4  ;;  %v609_v28 = vrot.slane %v565_v16, 4 }
  0xac   : > { %v527_v24 = vsel %vm526_vm8, %v523_v23, %v525_v22  ;;  %v528_v25 = vsel %vm526_vm8, %v525_v22, %v523_v23 }
  0xad   : > { %v542_v29 = vmul.f32 %v535_v17, %v527_v24  ;;  %v543_v30 = vmul.f32 %v539_v18, %v528_v25 }
  0xaf   : > { %v569_v32 = vpop.permute.xlu1 %568  ;;  %v620_v34 = vsel %vm612_vm6, %v543_v30, %v609_v28  ;;  %v567_v35 = vpop.permute.xlu0 %566  ;;  %v619_v8 = vsel %vm612_vm6, %v542_v29, %v608_v27 }
  0xb0   : > { %v1234_v12 = vpack.c.bf16 %v620_v34, %v618_v33  ;;  %v571_v37 = vsel %vm570_vm9, %v567_v35, %v569_v32  ;;  %v572_v38 = vsel %vm570_vm9, %v569_v32, %v567_v35  ;;  %v1236_v39 = vpack.c.bf16 %v619_v8, %v617_v36 }
  0xb1   : > { %v587_v40 = vmul.f32 %v583_v26, %v572_v38  ;;  %v586_v11 = vmul.f32 %v579_v31, %v571_v37 }
  0xb2   : > { %1235 = vmatprep.subr.bf16.mxu0 %v1234_v12 }
  0xb3   : > { %1237 = vmatpush1.bf16.msra.mxu0 %v1236_v39 }
  0xb4   : > { %1202 = vmatprep.subr.msk.mxu0 %vm612_vm6, %v587_v40 }
  0xb7   : > { %1203 = vmatpush1.msk.msra.mxu0 %vm612_vm6, %v586_v11 }
  0xb8   : > { %1204 = vmatmul.mubr.msk.f32.vlgmr.msra.gmra.mrb[0].mxu0 %vm628_vm10, %v621_v2 }
  0xc0   : > { %v626_v1 = vpop.permute.xlu0 %625 }
 0x18b   : > { %v704_v41 = vpop.f32.mrb[0].mxu0 }
 0x18c   : > { %v705_v42 = vadd.f32 %v704_v41, %v626_v1  ;;  %v706_v43 = vpop.f32.mrb[1].mxu0 }
 0x18d   : > { %v707_v44 = vadd.f32 %v706_v43, %v626_v1 }
 0x18e   : > { %712 = vst [vmem:[%s711_s22] sm:$0xff] %v705_v42  ;;  %v722_v45 = vmul.f32 %v705_v42, %v705_v42 }
 0x18f   : > { %713 = vst [vmem:[%s711_s22 + $0x8] sm:$0xff] %v707_v44  ;;  %v715_v46 = vadd.f32 %v707_v44, %v705_v42  ;;  %v723_v47 = vmul.f32 %v707_v44, %v707_v44 }
 0x191   : > { %716 = vadd.xlane.f32.xlu1 %v715_v46  ;;  %v724_v48 = vadd.f32 %v723_v47, %v722_v45 }
 0x193   : > { %725 = vadd.xlane.f32.xlu0 %v724_v48 }
 0x21e   : > { %v717_v50 = vpop.xlane.xlu1 %716 }
 0x21f   : > { %v718_v52 = vadd.f32 %v717_v50, %v714_v49 }
 0x220   : > { %v726_v53 = vpop.xlane.xlu0 %725 }
 0x221   : > { %720 = vst.msk [vmem:[#allocation3] sm:$0xff] %vm719_vm11, %v718_v52  ;;  %v727_v54 = vadd.f32 %v726_v53, %v721_v51 }
 0x223   : > { %728 = vst.msk [vmem:[#allocation4] sm:$0xff] %vm719_vm11, %v727_v54 }
 0x224 PF: > { %p1207_p11 = scmp.ne.s32.totalorder %s1352_s14, 1 }
 0x225   : > { %p1208_p12 = scmp.ne.s32.totalorder (!%p1207_p11), %s1348_s13, 0 }
 0x226   : > { %732 = sbr.rel (%p1207_p11) target bundleno = 1241 (0x4d9), region = 72 }
 0x22d   : > { %736 = sbr.rel (%p1208_p12) target bundleno = 584 (0x248), region = 76  ;;  %v737_v55 = vld [vmem:[#allocation3] sm:$0xff] (!%p1208_p12)  ;;  %v739_v56 = vld [vmem:[#allocation4] sm:$0xff] (!%p1208_p12)  ;;  %vm747_vm12 = vcmask (!%p1208_p12), 7168   ;;  %v1377_v59 = vmov (!%p1208_p12), 0.0  }
 0x22e   : > { %v738_v57 = vmul.f32 (!%p1208_p12), 0.001953125, %v737_v55  ;;  %v740_v58 = vmul.f32 (!%p1208_p12), 0.001953125, %v739_v56  ;;  %753 = vst.msk [vmem:[#allocation3] sm:$0xff] (!%p1208_p12), %vm747_vm12, %v1377_v59  ;;  %754 = vst.msk [vmem:[#allocation4] sm:$0xff] (!%p1208_p12), %vm747_vm12, %v1377_v59  ;;  %v743_v63 = vld [vmem:[%s1735_s4] sm:$0xff] (!%p1208_p12) }
 0x22f   : > { %v749_v4 = vld [vmem:[%s1736_s5] sm:$0xff] (!%p1208_p12) }
 0x230   : > { %v741_v60 = vmul.f32 (!%p1208_p12), %v738_v57, %v738_v57 }
 0x232   : > { %v742_v61 = vsub.f32 (!%p1208_p12), %v740_v58, %v741_v60 }
 0x234   : > { %v744_v62 = vadd.f32 1e-05, %v742_v61 }
 0x236   : > { %1320 = vrsqrt.f32 %v744_v62 }
 0x240   : > { %v1321_v0 = vpop.eup %1320 }
 0x241   : > { %v746_v3 = vmul.f32 %v1321_v0, %v743_v63 }
 0x243   : > { %748 = vst.msk [vmem:[#allocation5] sm:$0xff] %vm747_vm12, %v746_v3  ;;  %v750_v5 = vmul.f32 %v746_v3, %v738_v57 }
 0x245   : > { %v751_v6 = vsub.f32 %v749_v4, %v750_v5 }
 0x247   : > { %752 = vst.msk [vmem:[#allocation6] sm:$0xff] %vm747_vm12, %v751_v6 }
 0x248 PF: > { %v1378_v9 = vmov 0   ;;  %s1228_s27 = sshll.u32 %s1348_s13, 4  ;;  %s1379_s30 = smov 16   ;;  %v956_v23 = vld [vmem:[%s1738_s7] sm:$0xff]  ;;  %v1387_v24 = vmov 0.0   ;;  %v782_v25 = vlaneseq  ;;  %vm962_vm5 = vcmask 588800  }
 0x249   : > { %1322 = vset.pattern.permute.xlu0 %v1378_v9  ;;  %s1613_s28 = scalar_lea.vmem [#allocation2], %s1228_s27  ;;  %s1380_s11 = smov 17   ;;  %1030 = vmatprep.mubr.f32.mxu0 %v1387_v24  ;;  %v787_v31 = vld [vmem:[%s1732_s1] ss:$8 sm:$0x3]  ;;  %vm1044_vm6 = vcmask 7168  }
 0x24a   : > { %v760_v7 = vld [vmem:[#allocation5] sm:$0xff]  ;;  %v758_v14 = vld [vmem:[%s1613_s28] sm:$0xff]  ;;  %v759_v15 = vld [vmem:[%s1613_s28 + $0x8] sm:$0xff]  ;;  %s1381_s12 = smov 15   ;;  %s1382_s20 = smov 1   ;;  %v790_v26 = vshrl.u32 %v782_v25, 7 }
 0x24b   : > { %763 = vperm.xlu0 %1322, %v760_v7   ;;  %s1383_s21 = smov 127   ;;  %s1384_s22 = smov 113   ;;  %v1640_v29 = vand.u32 127, %v782_v25  ;;  %v1211_v33 = vld [vmem:[%s1732_s1 + $0x1] ss:$8 sm:$0x3] }
 0x24c   : > { %s1385_s23 = smov 112   ;;  %s1386_s24 = smov 111   ;;  %v1642_v30 = vsub.s32 0, %v790_v26  ;;  %v1647_v32 = vsub.s32 1, %v790_v26 }
 0x24d   : > { %vm784_vm13 = vcmp.lt.s32.totalorder %v1640_v29, 17  ;;  %vm805_vm14 = vcmp.lt.s32.totalorder %v1640_v29, 16  ;;  %v1212_v43 = vld [vmem:[%s1732_s1 + $0x2] ss:$8 sm:$0x3]  ;;  %vm827_vm15 = vcmp.lt.s32.totalorder %v1640_v29, 15 }
 0x24e   : > { %v768_v10 = vld [vmem:[#allocation6] sm:$0xff]  ;;  %v792_v36 = vrot.slane %v787_v31, %v1642_v30  ;;  %v814_v8 = vrot.slane %v1211_v33, %v1642_v30  ;;  %v796_v12 = vrot.slane %v787_v31, %v1647_v32  ;;  %v818_v37 = vrot.slane %v1211_v33, %v1647_v32  ;;  %v1213_v46 = vld [vmem:[%s1732_s1 + $0x3] ss:$8 sm:$0x3] }
 0x24f   : > { %771 = vperm.xlu0 %1322, %v768_v10   ;;  %v836_v50 = vrot.slane %v1212_v43, %v1642_v30  ;;  %v840_v52 = vrot.slane %v1212_v43, %v1647_v32  ;;  %vm849_vm0 = vcmp.lt.s32.totalorder %v1640_v29, 1  ;;  %v858_v53 = vrot.slane %v1213_v46, %v1642_v30  ;;  %v1214_v55 = vld [vmem:[%s1732_s1 + $0x5] ss:$8 sm:$0x3] }
 0x250   : > { %v862_v54 = vrot.slane %v1213_v46, %v1647_v32  ;;  %vm871_vm1 = vcmp.lt.s32.totalorder %v1640_v29, 127  ;;  %v880_v61 = vrot.slane %v1214_v55, %v1642_v30  ;;  %v884_v62 = vrot.slane %v1214_v55, %v1647_v32 }
 0x251   : > { %vm893_vm2 = vcmp.lt.s32.totalorder %v1640_v29, 113  ;;  %vm915_vm3 = vcmp.lt.s32.totalorder %v1640_v29, 112  ;;  %vm937_vm4 = vcmp.lt.s32.totalorder %v1640_v29, 111 }
 0x2ca   : > { %v764_v13 = vpop.permute.xlu0 %763 }
 0x2cb   : > { %v766_v16 = vmul.f32 %v764_v13, %v758_v14  ;;  %v767_v18 = vmul.f32 %v764_v13, %v759_v15 }
 0x2ce   : > { %v772_v17 = vpop.permute.xlu0 %771 }
 0x2cf   : > { %v774_v19 = vadd.f32 %v772_v17, %v766_v16  ;;  %v775_v20 = vadd.f32 %v772_v17, %v767_v18  ;;  %v1215_v16 = vld [vmem:[%s1732_s1 + $0x6] ss:$8 sm:$0x3]  ;;  %v1216_v17 = vld [vmem:[%s1732_s1 + $0x7] ss:$8 sm:$0x3] }
 0x2d0   : > { %v906_v25 = vrot.slane %v1215_v16, %v1647_v32  ;;  %v924_v26 = vrot.slane %v1216_v17, %v1642_v30 }
 0x2d1   : > { %v1617_v21 = vmax.f32 %v774_v19, 0.0  ;;  %v1621_v22 = vmax.f32 %v775_v20, 0.0 }
 0x2d3   : > { %801 = vrot.lane.b32.xlu0 %v1617_v21, %s1379_s30  ;;  %778 = vrot.lane.b32.xlu1 %v1617_v21, %s1380_s11 }
 0x2d7   : > { %823 = vrot.lane.b32.xlu0 %v1617_v21, %s1381_s12  ;;  %780 = vrot.lane.b32.xlu1 %v1621_v22, %s1380_s11 }
 0x2db   : > { %845 = vrot.lane.b32.xlu0 %v1617_v21, %s1382_s20  ;;  %803 = vrot.lane.b32.xlu1 %v1621_v22, %s1379_s30 }
 0x2df   : > { %867 = vrot.lane.b32.xlu0 %v1617_v21, %s1383_s21  ;;  %825 = vrot.lane.b32.xlu1 %v1621_v22, %s1381_s12 }
 0x2e3   : > { %889 = vrot.lane.b32.xlu0 %v1617_v21, %s1384_s22  ;;  %847 = vrot.lane.b32.xlu1 %v1621_v22, %s1382_s20 }
 0x2e7   : > { %911 = vrot.lane.b32.xlu0 %v1617_v21, %s1385_s23  ;;  %869 = vrot.lane.b32.xlu1 %v1621_v22, %s1383_s21 }
 0x2eb   : > { %933 = vrot.lane.b32.xlu0 %v1617_v21, %s1386_s24  ;;  %891 = vrot.lane.b32.xlu1 %v1621_v22, %s1384_s22 }
 0x2ef   : > { %959 = vperm.xlu0 %1322, %v956_v23   ;;  %913 = vrot.lane.b32.xlu1 %v1621_v22, %s1385_s23  ;;  %v902_v23 = vrot.slane %v1215_v16, %v1642_v30 }
 0x2f3   : > { %935 = vrot.lane.b32.xlu1 %v1621_v22, %s1386_s24 }
 0x345   : > { %v802_v27 = vpop.permute.xlu0 %801  ;;  %v779_v28 = vpop.permute.xlu1 %778 }
 0x349   : > { %v824_v34 = vpop.permute.xlu0 %823  ;;  %v781_v35 = vpop.permute.xlu1 %780 }
 0x34a   : > { %v785_v38 = vsel %vm784_vm13, %v779_v28, %v781_v35  ;;  %v786_v39 = vsel %vm784_vm13, %v781_v35, %v779_v28  ;;  %v1217_v28 = vld [vmem:[%s1732_s1 + $0x10] ss:$8 sm:$0x3] }
 0x34b   : > { %v799_v41 = vmul.f32 %v792_v36, %v786_v39  ;;  %v800_v44 = vmul.f32 %v796_v12, %v785_v38  ;;  %v950_v35 = vrot.slane %v1217_v28, %v1647_v32 }
 0x34d   : > { %v846_v40 = vpop.permute.xlu0 %845  ;;  %v804_v11 = vpop.permute.xlu1 %803 }
 0x34e   : > { %v806_v2 = vsel %vm805_vm14, %v802_v27, %v804_v11  ;;  %v807_v1 = vsel %vm805_vm14, %v804_v11, %v802_v27  ;;  %v928_v27 = vrot.slane %v1216_v17, %v1647_v32  ;;  %v955_v32 = vld [vmem:[%s1737_s6] sm:$0xff] }
 0x34f   : > { %v821_v42 = vmul.f32 %v814_v8, %v807_v1  ;;  %v822_v45 = vmul.f32 %v818_v37, %v806_v2  ;;  %v946_v2 = vrot.slane %v1217_v28, %v1642_v30 }
 0x351   : > { %v826_v47 = vpop.permute.xlu1 %825  ;;  %v1238_v48 = vpack.c.bf16 %v822_v45, %v800_v44  ;;  %v1240_v49 = vpack.c.bf16 %v821_v42, %v799_v41  ;;  %v868_v51 = vpop.permute.xlu0 %867 }
 0x352   : > { %v828_v56 = vsel %vm827_vm15, %v824_v34, %v826_v47  ;;  %v829_v57 = vsel %vm827_vm15, %v826_v47, %v824_v34 }
 0x353   : > { %1239 = vmatprep.subr.bf16.mxu0 %v1238_v48  ;;  %v843_v63 = vmul.f32 %v836_v50, %v829_v57  ;;  %v844_v0 = vmul.f32 %v840_v52, %v828_v56 }
 0x354   : > { %1241 = vmatpush1.bf16.msra.mxu0 %v1240_v49 }
 0x355   : > { %v848_v58 = vpop.permute.xlu1 %847  ;;  %v890_v5 = vpop.permute.xlu0 %889 }
 0x356   : > { %v850_v59 = vsel %vm849_vm0, %v846_v40, %v848_v58  ;;  %v851_v60 = vsel %vm849_vm0, %v848_v58, %v846_v40 }
 0x357   : > { %v865_v3 = vmul.f32 %v858_v53, %v851_v60  ;;  %v866_v4 = vmul.f32 %v862_v54, %v850_v59  ;;  %v1046_v53 = vld [vmem:[#allocation4] sm:$0xff] }
 0x359   : > { %v870_v6 = vpop.permute.xlu1 %869  ;;  %v1242_v7 = vpack.c.bf16 %v866_v4, %v844_v0  ;;  %v1244_v9 = vpack.c.bf16 %v865_v3, %v843_v63  ;;  %v912_v24 = vpop.permute.xlu0 %911 }
 0x35a   : > { %v872_v10 = vsel %vm871_vm1, %v868_v51, %v870_v6  ;;  %v873_v13 = vsel %vm871_vm1, %v870_v6, %v868_v51  ;;  %v1039_v51 = vld [vmem:[#allocation3] sm:$0xff] }
 0x35b   : > { %v887_v14 = vmul.f32 %v880_v61, %v872_v10  ;;  %v888_v15 = vmul.f32 %v884_v62, %v873_v13  ;;  %1243 = vmatprep.subr.bf16.mxu0 %v1242_v7 }
 0x35c   : > { %1245 = vmatpush1.bf16.msra.mxu0 %v1244_v9 }
 0x35d   : > { %v892_v18 = vpop.permute.xlu1 %891  ;;  %v1246_v19 = vpack.c.bf16 %v888_v15, %v1621_v22  ;;  %v1248_v20 = vpack.c.bf16 %v887_v14, %v1617_v21  ;;  %v934_v38 = vpop.permute.xlu0 %933 }
 0x35e   : > { %v894_v31 = vsel %vm893_vm2, %v890_v5, %v892_v18  ;;  %v895_v22 = vsel %vm893_vm2, %v892_v18, %v890_v5 }
 0x35f   : > { %1247 = vmatprep.subr.bf16.mxu0 %v1246_v19  ;;  %v909_v36 = vmul.f32 %v902_v23, %v894_v31  ;;  %v910_v8 = vmul.f32 %v906_v25, %v895_v22 }
 0x360   : > { %1249 = vmatpush1.bf16.msra.mxu0 %v1248_v20 }
 0x361   : > { %v914_v21 = vpop.permute.xlu1 %913 }
 0x362   : > { %v916_v33 = vsel %vm915_vm3, %v912_v24, %v914_v21  ;;  %v917_v34 = vsel %vm915_vm3, %v914_v21, %v912_v24 }
 0x363   : > { %v931_v12 = vmul.f32 %v924_v26, %v916_v33  ;;  %v932_v37 = vmul.f32 %v928_v27, %v917_v34 }
 0x365   : > { %v936_v39 = vpop.permute.xlu1 %935  ;;  %v1250_v40 = vpack.c.bf16 %v932_v37, %v910_v8  ;;  %v1252_v11 = vpack.c.bf16 %v931_v12, %v909_v36 }
 0x366   : > { %v939_v1 = vsel %vm937_vm4, %v936_v39, %v934_v38  ;;  %v938_v41 = vsel %vm937_vm4, %v934_v38, %v936_v39 }
 0x367   : > { %v954_v42 = vmul.f32 %v950_v35, %v939_v1  ;;  %1251 = vmatprep.subr.bf16.mxu0 %v1250_v40  ;;  %v953_v29 = vmul.f32 %v946_v2, %v938_v41 }
 0x368   : > { %1253 = vmatpush1.bf16.msra.mxu0 %v1252_v11 }
 0x369   : > { %982 = vmatprep.subr.mxu0 %v954_v42 }
 0x36c   : > { %983 = vmatpush1.msra.mxu0 %v953_v29 }
 0x36d   : > { %1218 = vmatmul.mubr.msk.f32.vlgmr.msra.gmra.mrb[0].mxu0 %vm962_vm5, %v955_v32 }
 0x36e   : > { %v960_v43 = vpop.permute.xlu0 %959 }
 0x440   : > { %v1032_v44 = vpop.f32.mrb[0].mxu0 }
 0x441   : > { %v1033_v45 = vadd.f32 %v1032_v44, %v960_v43  ;;  %v1034_v30 = vpop.f32.mrb[1].mxu0 }
 0x442   : > { %v1035_v46 = vadd.f32 %v1034_v30, %v960_v43 }
 0x443   : > { %1037 = vst [vmem:[%s1613_s28] sm:$0xff] %v1033_v45  ;;  %v1047_v47 = vmul.f32 %v1033_v45, %v1033_v45 }
 0x444   : > { %1038 = vst [vmem:[%s1613_s28 + $0x8] sm:$0xff] %v1035_v46  ;;  %v1040_v48 = vadd.f32 %v1035_v46, %v1033_v45  ;;  %v1048_v49 = vmul.f32 %v1035_v46, %v1035_v46 }
 0x446   : > { %1041 = vadd.xlane.f32.xlu1 %v1040_v48  ;;  %v1049_v50 = vadd.f32 %v1048_v49, %v1047_v47 }
 0x448   : > { %1050 = vadd.xlane.f32.xlu0 %v1049_v50 }
 0x4d3   : > { %v1042_v52 = vpop.xlane.xlu1 %1041 }
 0x4d4   : > { %v1043_v54 = vadd.f32 %v1042_v52, %v1039_v51 }
 0x4d5   : > { %v1051_v55 = vpop.xlane.xlu0 %1050 }
 0x4d6   : > { %1045 = vst.msk [vmem:[#allocation3] sm:$0xff] %vm1044_vm6, %v1043_v54  ;;  %v1052_v56 = vadd.f32 %v1051_v55, %v1046_v53 }
 0x4d8   : > { %1053 = vst.msk [vmem:[#allocation4] sm:$0xff] %vm1044_vm6, %v1052_v56 }
 0x4d9 PF: > { %p1219_p13 = scmp.ne.s32.totalorder %s1352_s14, 2 }
 0x4da   : > { %p1220_p0 = scmp.ne.s32.totalorder (!%p1219_p13), %s1348_s13, 0 }
 0x4db   : > { %1057 = sbr.rel (%p1219_p13) target bundleno = 1417 (0x589), region = 80 }
 0x4e2   : > { %1061 = sbr.rel (%p1220_p0) target bundleno = 1277 (0x4fd), region = 84  ;;  %v1062_v57 = vld [vmem:[#allocation3] sm:$0xff] (!%p1220_p0)  ;;  %v1064_v58 = vld [vmem:[#allocation4] sm:$0xff] (!%p1220_p0)  ;;  %vm1072_vm7 = vcmask (!%p1220_p0), 7168   ;;  %v1388_v61 = vmov (!%p1220_p0), 0.0  }
 0x4e3   : > { %v1063_v59 = vmul.f32 (!%p1220_p0), 0.001953125, %v1062_v57  ;;  %v1065_v60 = vmul.f32 (!%p1220_p0), 0.001953125, %v1064_v58  ;;  %1078 = vst.msk [vmem:[#allocation3] sm:$0xff] (!%p1220_p0), %vm1072_vm7, %v1388_v61  ;;  %1079 = vst.msk [vmem:[#allocation4] sm:$0xff] (!%p1220_p0), %vm1072_vm7, %v1388_v61  ;;  %v1068_v3 = vld [vmem:[%s1739_s8] sm:$0xff] (!%p1220_p0) }
 0x4e4   : > { %v1074_v6 = vld [vmem:[%s1740_s9] sm:$0xff] (!%p1220_p0) }
 0x4e5   : > { %v1066_v62 = vmul.f32 (!%p1220_p0), %v1063_v59, %v1063_v59 }
 0x4e7   : > { %v1067_v63 = vsub.f32 (!%p1220_p0), %v1065_v60, %v1066_v62 }
 0x4e9   : > { %v1069_v0 = vadd.f32 1e-05, %v1067_v63 }
 0x4eb   : > { %1323 = vrsqrt.f32 %v1069_v0 }
 0x4f5   : > { %v1324_v4 = vpop.eup %1323 }
 0x4f6   : > { %v1071_v5 = vmul.f32 %v1324_v4, %v1068_v3 }
 0x4f8   : > { %1073 = vst.msk [vmem:[#allocation5] sm:$0xff] %vm1072_vm7, %v1071_v5  ;;  %v1075_v7 = vmul.f32 %v1071_v5, %v1063_v59 }
 0x4fa   : > { %v1076_v9 = vsub.f32 %v1074_v6, %v1075_v7 }
 0x4fc   : > { %1077 = vst.msk [vmem:[#allocation6] sm:$0xff] %vm1072_vm7, %v1076_v9 }
 0x4fd PF: > { %v1389_v13 = vmov 0   ;;  %s1229_s25 = sshll.u32 %s1348_s13, 4 }
 0x4fe   : > { %1325 = vset.pattern.permute.xlu0 %v1389_v13  ;;  %s1082_s26 = scalar_lea.vmem [#allocation2], %s1229_s25 }
 0x4ff   : > { %v1085_v10 = vld [vmem:[#allocation5] sm:$0xff]  ;;  %v1083_v16 = vld [vmem:[%s1082_s26] sm:$0xff]  ;;  %v1084_v17 = vld [vmem:[%s1082_s26 + $0x8] sm:$0xff] }
 0x500   : > { %1088 = vperm.xlu0 %1325, %v1085_v10  }
 0x503   : > { %v1093_v14 = vld [vmem:[#allocation6] sm:$0xff] }
 0x504   : > { %1096 = vperm.xlu0 %1325, %v1093_v14  }
 0x57f   : > { %v1089_v15 = vpop.permute.xlu0 %1088 }
 0x580   : > { %v1091_v18 = vmul.f32 %v1089_v15, %v1083_v16  ;;  %v1092_v19 = vmul.f32 %v1089_v15, %v1084_v17 }
 0x583   : > { %v1097_v20 = vpop.permute.xlu0 %1096 }
 0x584   : > { %v1099_v23 = vadd.f32 %v1097_v20, %v1091_v18  ;;  %v1100_v24 = vadd.f32 %v1097_v20, %v1092_v19 }
 0x586   : > { %v1101_v25 = vmax.f32 %v1099_v23, 0.0  ;;  %v1102_v26 = vmax.f32 %v1100_v24, 0.0 }
 0x588   : > { %1103 = vst [vmem:[%s1489_s29] sm:$0xff] %v1101_v25  ;;  %1104 = vst [vmem:[%s1489_s29 + $0x8] sm:$0xff] %v1102_v26 }
 0x589 PF: > { %s20_s17 = sadd.s32 1, %s1364_s17   ;;  %s1742_s13 = smov %s1356_s15 }
 0x58a   : > { %p17_p1 = scmp.ge.s32.totalorder %s20_s17, 8   ;;  %s1743_s14 = smov %s1360_s16 }
 0x58b   : > { %s1744_s15 = smov %s1747_s18  ;;  %s1745_s16 = smov %s1751_s19 }
 0x58c   :  { %19 = sbr.rel (!%p17_p1) target bundleno = 3 (0x3), region = 131 }

</bundles_post_ra>
